<compile_context>
chip_gen: v7x
topology: tpu7x:2x2x1
jax: 0.10.0
libtpu: 0.0.40
codegen_flags: <defaults>
</compile_context>

<pallas_src>
import functools

import jax
import jax.numpy as jnp
from jax import lax
from jax.experimental import pallas as pl
from jax.experimental.pallas import tpu as pltpu


def _round_up(x, m):
    return (x + m - 1) // m * m


@functools.lru_cache(maxsize=None)
def _vmem_capacity_bytes():
    """Physical VMEM per core, queried lazily per process (not at import)."""
    cap = 0
    try:
        info = pltpu.get_tpu_info()
        cap = int(getattr(info, "vmem_capacity_bytes", 0) or 0)
    except Exception:
        cap = 0
    if cap <= 0:
        try:
            kind = jax.devices()[0].device_kind.lower()
        except Exception:
            kind = ""
        if "v7" in kind:
            cap = 64 << 20
        elif kind:
            cap = 128 << 20          # v5e / v6e
        else:
            cap = 64 << 20           # unknown: be conservative
    return cap


# ----------------------------------------------------------------------------
# Fused single-pass kernel: pool -> MLP -> rescale on a (bt, C, HW) block.
# ----------------------------------------------------------------------------
def _ca_fused_kernel(x_ref, w1_ref, b1_ref, w2_ref, b2_ref, o_ref, gate_ref,
                     *, inv_hw):
    # x block: (bt, C, HW) -- channels on sublanes, flattened spatial on lanes.
    # Spatial mean for the whole block at once, accumulated in f32 (bf16-safe).
    # HW is the true spatial extent (block == full array dim), no padding bias.
    gate_ref[...] = jnp.sum(x_ref[...], axis=-1, keepdims=True,
                            dtype=jnp.float32) * inv_hw          # (bt, C, 1)

    # Tiny squeeze/excite MLP per batch element (O(bt*C*Cr) MACs, hidden under
    # the block DMA).  Column (C, 1) layout avoids any lane<->sublane relayout;
    # fori_loop keeps code size independent of bt.
    w1v = w1_ref[...]
    b1v = b1_ref[...]
    w2v = w2_ref[...]
    b2v = b2_ref[...]

    def _mlp(b, carry):
        col = gate_ref[b]                                        # (C, 1) f32
        z1 = jnp.dot(w1v, col, preferred_element_type=jnp.float32) + b1v
        z1 = jnp.maximum(z1, 0.0)                                # (Cr, 1)
        z2 = jnp.dot(w2v, z1, preferred_element_type=jnp.float32) + b2v
        gate_ref[b] = jax.nn.sigmoid(z2)                         # (C, 1)
        return carry

    lax.fori_loop(0, x_ref.shape[0], _mlp, 0)

    # Rescale in the I/O dtype -- the big tile is never upcast to f32.
    o_ref[...] = (x_ref[...] * gate_ref[...].astype(o_ref.dtype)
                  ).astype(o_ref.dtype)


# ----------------------------------------------------------------------------
# Two-pass fallback kernel: lane-tiled broadcast multiply x * gate.
# ----------------------------------------------------------------------------
def _ca_scale_kernel(x_ref, g_ref, o_ref):
    # x block (1, C, hw_t); gate (B, C, 1) fully resident in VMEM (one DMA).
    gate = g_ref[pl.program_id(0)]                               # (C, 1) f32
    o_ref[0] = (x_ref[0] * gate.astype(o_ref.dtype)).astype(o_ref.dtype)


@functools.partial(jax.jit, static_argnames=("force_two_pass",))
def ca_layer(x, w1, b1, w2, b2, force_two_pass=False):
    """Channel attention.

    x: (B, C, H, W); w1: (Cr, C); b1: (Cr,); w2: (C, Cr); b2: (C,)
    (1x1 conv weights with the trailing 1x1 dims squeezed, biases 1-D).
    """
    B, C, H, W = x.shape
    Cr = w1.shape[0]
    HW = H * W
    itemsize = x.dtype.itemsize

    cap = _vmem_capacity_bytes()
    budget = int(cap * 0.65)          # headroom for compiler scratch / dbl-buf
    vmem_ceiling = min(100 << 20, int(cap * 0.9))

    per_b_block = C * HW * itemsize                              # one batch elem
    w_bytes = 2 * 4 * (2 * C * Cr + C + Cr)                      # f32 wts, dblbuf

    def fused_step_bytes(bt):
        # in + out blocks (double-buffered) + weights + (bt, C, 1) f32 scratch.
        return 4 * bt * per_b_block + w_bytes + 4 * bt * C

    use_fused = (not force_two_pass) and fused_step_bytes(1) <= budget

    x2 = x.reshape(B, C, HW)          # contiguous reshape: free under jit
    flops = 3 * B * C * HW + 4 * B * C * Cr
    bytes_rw = 2 * B * C * HW * itemsize + 4 * (2 * C * Cr + C + Cr)

    if use_fused:
        # Largest bt that fits the budget (no divisibility / cap-8 constraint);
        # keep >= 2 grid steps when B >= 2 so v7x megacore can use both cores.
        bt = max(1, min(B, (budget - w_bytes) // (4 * per_b_block + 4 * C)))
        if B >= 2:
            bt = min(bt, (B + 1) // 2)
        bt = int(bt)
        grid_b = pl.cdiv(B, bt)       # partial last batch block is safe: rows
                                      # are independent, OOB rows never written.

        out2 = pl.pallas_call(
            functools.partial(_ca_fused_kernel, inv_hw=1.0 / HW),
            out_shape=jax.ShapeDtypeStruct((B, C, HW), x.dtype),
            grid_spec=pltpu.PrefetchScalarGridSpec(
                num_scalar_prefetch=0,
                grid=(grid_b,),
                in_specs=[
                    # Last two block dims equal the full array dims -> the
                    # (8,128) divisibility rule is bypassed; no jnp.pad needed.
                    pl.BlockSpec((bt, C, HW), lambda i: (i, 0, 0)),
                    pl.BlockSpec((Cr, C), lambda i: (0, 0)),
                    pl.BlockSpec((Cr, 1), lambda i: (0, 0)),
                    pl.BlockSpec((C, Cr), lambda i: (0, 0)),
                    pl.BlockSpec((C, 1), lambda i: (0, 0)),
                ],
                out_specs=pl.BlockSpec((bt, C, HW), lambda i: (i, 0, 0)),
                scratch_shapes=[pltpu.VMEM((bt, C, 1), jnp.float32)],
            ),
            compiler_params=pltpu.CompilerParams(
                dimension_semantics=("parallel",),
                vmem_limit_bytes=int(
                    min(max(fused_step_bytes(bt) + (4 << 20), 16 << 20),
                        vmem_ceiling)),
            ),
            cost_estimate=pl.CostEstimate(
                flops=int(flops),
                transcendentals=int(B * C),
                bytes_accessed=int(bytes_rw)),
        )(x2,
          w1.astype(jnp.float32),
          b1.reshape(Cr, 1).astype(jnp.float32),
          w2.astype(jnp.float32),
          b2.reshape(C, 1).astype(jnp.float32))
    else:
        # Two-pass fallback (per-image footprint exceeds the VMEM budget, e.g.
        # large C*HW on v7x).  The gate is O(B*C) work -> plain XLA (one extra
        # read of x); the bandwidth-heavy broadcast multiply is Pallas.
        # TODO(synk): fold both passes into a single revisit-style pallas_call
        # with a VMEM-cached prefix of HW tiles to push read traffic below 2x.
        f32 = jnp.float32
        pooled = jnp.mean(x.astype(f32), axis=(2, 3))                    # (B, C)
        z1 = jnp.maximum(pooled @ w1.astype(f32).T + b1.astype(f32)[None, :],
                         0.0)
        z2 = z1 @ w2.astype(f32).T + b2.astype(f32)[None, :]
        gate = jax.nn.sigmoid(z2).reshape(B, C, 1)                       # f32

        gate_bytes = B * C * 4
        # HW tile: as large as the budget allows, balanced so the (masked)
        # partial tail tile is as full as possible; no jnp.pad / output slice.
        max_hw_t = max(128, ((budget - gate_bytes - (1 << 20))
                             // (4 * C * itemsize)) // 128 * 128)
        # TODO(synk): also tile C when C is so large that a 128-lane tile
        # exceeds the VMEM budget.
        if HW <= max_hw_t:
            hw_t = HW
        else:
            n_hw = pl.cdiv(HW, max_hw_t)
            hw_t = min(_round_up(pl.cdiv(HW, n_hw), 128), max_hw_t)
        grid_hw = pl.cdiv(HW, hw_t)
        step_bytes = 4 * C * hw_t * itemsize + 2 * gate_bytes

        out2 = pl.pallas_call(
            _ca_scale_kernel,
            out_shape=jax.ShapeDtypeStruct((B, C, HW), x.dtype),
            grid_spec=pltpu.PrefetchScalarGridSpec(
                num_scalar_prefetch=0,
                grid=(B, grid_hw),
                in_specs=[
                    pl.BlockSpec((1, C, hw_t), lambda b, h: (b, 0, h)),
                    # Whole gate resident in VMEM: one DMA for the entire grid.
                    pl.BlockSpec((B, C, 1), lambda b, h: (0, 0, 0)),
                ],
                out_specs=pl.BlockSpec((1, C, hw_t), lambda b, h: (b, 0, h)),
            ),
            compiler_params=pltpu.CompilerParams(
                dimension_semantics=("parallel", "parallel"),
                vmem_limit_bytes=int(
                    min(max(step_bytes + (4 << 20), 16 << 20), vmem_ceiling)),
            ),
            cost_estimate=pl.CostEstimate(
                flops=int(B * C * HW),
                transcendentals=0,
                bytes_accessed=int(2 * B * C * HW * itemsize + gate_bytes)),
        )(x2, gate)

    return out2.reshape(B, C, H, W)


def ca_layer_ref(x, w1, b1, w2, b2):
    """Pure-JAX reference mirroring the PyTorch forward."""
    pooled = jnp.mean(x, axis=(2, 3), keepdims=True)                  # (B,C,1,1)
    z1 = jnp.einsum("rc,bcxy->brxy", w1, pooled) + b1[None, :, None, None]
    z1 = jnp.maximum(z1, 0.0)
    z2 = jnp.einsum("cr,brxy->bcxy", w2, z1) + b2[None, :, None, None]
    return x * jax.nn.sigmoid(z2)


if __name__ == "__main__":
    B, C, H, W = 2, 32, 16, 16          # C must be a multiple of 8 (Cr = C // 8)
    Cr = C // 8

    key = jax.random.PRNGKey(0)
    kx, kw1, kb1, kw2, kb2 = jax.random.split(key, 5)

    x = jax.random.normal(kx, (B, C, H, W), dtype=jnp.float32)
    # 1x1 conv params: PyTorch weight (out, in, 1, 1) -> (out, in); bias (out,).
    w1 = jax.random.normal(kw1, (Cr, C), dtype=jnp.float32) * 0.1
    b1 = jax.random.normal(kb1, (Cr,), dtype=jnp.float32) * 0.1
    w2 = jax.random.normal(kw2, (C, Cr), dtype=jnp.float32) * 0.1
    b2 = jax.random.normal(kb2, (C,), dtype=jnp.float32) * 0.1

    ref = ca_layer_ref(x, w1, b1, w2, b2)

    # Fused single-pass path (chosen automatically at this size).
    out = jax.block_until_ready(ca_layer(x, w1, b1, w2, b2))
    assert out.shape == (B, C, H, W)
    assert jnp.allclose(out, ref, atol=1e-5, rtol=1e-5), "fused path mismatch"

    # Two-pass fallback path (used automatically when the fused per-step VMEM
    # footprint exceeds the budget, e.g. large C*HW on v7x); exercised here.
    out2 = jax.block_until_ready(ca_layer(x, w1, b1, w2, b2,
                                          force_two_pass=True))
    assert jnp.allclose(out2, ref, atol=1e-5, rtol=1e-5), "two-pass mismatch"

    print("KERNEL_OK")
</pallas_src>

<mosaic_0001>
module attributes {stable_mosaic.version = 11 : i64} {
  func.func @_ca_fused_kernel(%arg0: i32, %arg1: memref<1x32x256xf32, #tpu.memory_space<vmem>>, %arg2: memref<4x32xf32, #tpu.memory_space<vmem>>, %arg3: memref<4x1xf32, #tpu.memory_space<vmem>>, %arg4: memref<32x4xf32, #tpu.memory_space<vmem>>, %arg5: memref<32x1xf32, #tpu.memory_space<vmem>>, %arg6: memref<1x32x256xf32, #tpu.memory_space<vmem>>, %arg7: memref<1x32x1xf32, #tpu.memory_space<vmem>>) attributes {dimension_semantics = [#tpu.dimension_semantics<parallel>], iteration_bounds = array<i64: 2>, scalar_prefetch = 0 : i64, scratch_operands = 1 : i64, tpu.core_type = #tpu.core_type<tc>, window_params = [{transform_indices = @transform_0, window_bounds = array<i64: 1, 32, 256>}, {pipeline_mode = #tpu.pipeline_mode<synchronous>, transform_indices = @transform_1, window_bounds = array<i64: 4, 32>}, {pipeline_mode = #tpu.pipeline_mode<synchronous>, transform_indices = @transform_2, window_bounds = array<i64: 4, 1>}, {pipeline_mode = #tpu.pipeline_mode<synchronous>, transform_indices = @transform_3, window_bounds = array<i64: 32, 4>}, {pipeline_mode = #tpu.pipeline_mode<synchronous>, transform_indices = @transform_4, window_bounds = array<i64: 32, 1>}, {transform_indices = @transform_5, window_bounds = array<i64: 1, 32, 256>}]} {
    %c0 = arith.constant 0 : index
    %c0_0 = arith.constant 0 : index
    %c0_1 = arith.constant 0 : index
    %0 = vector.load %arg1[%c0, %c0_0, %c0_1] : memref<1x32x256xf32, #tpu.memory_space<vmem>>, vector<1x32x256xf32>
    %cst = arith.constant dense<0.000000e+00> : vector<1x32xf32>
    %1 = vector.multi_reduction <add>, %0, %cst [2] : vector<1x32x256xf32> to vector<1x32xf32>
    %2 = vector.shape_cast %1 : vector<1x32xf32> to vector<1x32x1xf32>
    %cst_2 = arith.constant 3.906250e-03 : f32
    %3 = vector.broadcast %cst_2 : f32 to vector<1x32x1xf32>
    %4 = arith.mulf %2, %3 : vector<1x32x1xf32>
    %c0_3 = arith.constant 0 : index
    %c0_4 = arith.constant 0 : index
    %c0_5 = arith.constant 0 : index
    %5 = vector.load %arg7[%c0_3, %c0_4, %c0_5] : memref<1x32x1xf32, #tpu.memory_space<vmem>>, vector<1x32x1xf32>
    tpu.vector_store %arg7[%c0_3, %c0_4, %c0_5], %4 {strides = array<i32>} : memref<1x32x1xf32, #tpu.memory_space<vmem>>, vector<1x32x1xf32>,
    %c0_6 = arith.constant 0 : index
    %c0_7 = arith.constant 0 : index
    %6 = vector.load %arg2[%c0_6, %c0_7] : memref<4x32xf32, #tpu.memory_space<vmem>>, vector<4x32xf32>
    %c0_8 = arith.constant 0 : index
    %c0_9 = arith.constant 0 : index
    %7 = vector.load %arg3[%c0_8, %c0_9] : memref<4x1xf32, #tpu.memory_space<vmem>>, vector<4x1xf32>
    %c0_10 = arith.constant 0 : index
    %c0_11 = arith.constant 0 : index
    %8 = vector.load %arg4[%c0_10, %c0_11] : memref<32x4xf32, #tpu.memory_space<vmem>>, vector<32x4xf32>
    %c0_12 = arith.constant 0 : index
    %c0_13 = arith.constant 0 : index
    %9 = vector.load %arg5[%c0_12, %c0_13] : memref<32x1xf32, #tpu.memory_space<vmem>>, vector<32x1xf32>
    %c0_i32 = arith.constant 0 : i32
    %10 = arith.index_cast %c0_i32 : i32 to index
    %c0_14 = arith.constant 0 : index
    %c0_15 = arith.constant 0 : index
    %11 = vector.load %arg7[%10, %c0_14, %c0_15] : memref<1x32x1xf32, #tpu.memory_space<vmem>>, vector<1x32x1xf32>
    %12 = vector.shape_cast %11 : vector<1x32x1xf32> to vector<32x1xf32>
    %cst_16 = arith.constant dense<0.000000e+00> : vector<4x1xf32>
    %13 = tpu.matmul %6, %12, %cst_16 {dimension_numbers = #tpu.dot_dimension_numbers<[1], [0], [0], [1], [0, 0, 1, 1], [], []>} : vector<4x32xf32>, vector<32x1xf32>, vector<4x1xf32> -> vector<4x1xf32>
    %14 = arith.addf %13, %7 : vector<4x1xf32>
    %cst_17 = arith.constant 0.000000e+00 : f32
    %15 = vector.broadcast %cst_17 : f32 to vector<4x1xf32>
    %16 = arith.maximumf %14, %15 : vector<4x1xf32>
    %cst_18 = arith.constant dense<0.000000e+00> : vector<32x1xf32>
    %17 = tpu.matmul %8, %16, %cst_18 {dimension_numbers = #tpu.dot_dimension_numbers<[1], [0], [0], [1], [0, 0, 1, 1], [], []>} : vector<32x4xf32>, vector<4x1xf32>, vector<32x1xf32> -> vector<32x1xf32>
    %18 = arith.addf %17, %9 : vector<32x1xf32>
    %19 = arith.negf %18 : vector<32x1xf32>
    %20 = math.exp %19 : vector<32x1xf32>
    %cst_19 = arith.constant 1.000000e+00 : f32
    %21 = vector.broadcast %cst_19 : f32 to vector<32x1xf32>
    %22 = arith.addf %21, %20 : vector<32x1xf32>
    %23 = arith.divf %21, %22 : vector<32x1xf32>
    %24 = arith.index_cast %c0_i32 : i32 to index
    %c0_20 = arith.constant 0 : index
    %c0_21 = arith.constant 0 : index
    %25 = vector.load %arg7[%24, %c0_20, %c0_21] : memref<1x32x1xf32, #tpu.memory_space<vmem>>, vector<1x32x1xf32>
    %26 = vector.shape_cast %25 : vector<1x32x1xf32> to vector<32x1xf32>
    %27 = vector.shape_cast %23 : vector<32x1xf32> to vector<1x32x1xf32>
    tpu.vector_store %arg7[%24, %c0_20, %c0_21], %27 {strides = array<i32>} : memref<1x32x1xf32, #tpu.memory_space<vmem>>, vector<1x32x1xf32>,
    %c1_i32 = arith.constant 1 : i32
    %c0_22 = arith.constant 0 : index
    %c0_23 = arith.constant 0 : index
    %c0_24 = arith.constant 0 : index
    %28 = vector.load %arg1[%c0_22, %c0_23, %c0_24] : memref<1x32x256xf32, #tpu.memory_space<vmem>>, vector<1x32x256xf32>
    %c0_25 = arith.constant 0 : index
    %c0_26 = arith.constant 0 : index
    %c0_27 = arith.constant 0 : index
    %29 = vector.load %arg7[%c0_25, %c0_26, %c0_27] : memref<1x32x1xf32, #tpu.memory_space<vmem>>, vector<1x32x1xf32>
    %30 = vector.broadcast %29 : vector<1x32x1xf32> to vector<1x32x256xf32>
    %31 = arith.mulf %28, %30 : vector<1x32x256xf32>
    %c0_28 = arith.constant 0 : index
    %c0_29 = arith.constant 0 : index
    %c0_30 = arith.constant 0 : index
    %32 = vector.load %arg6[%c0_28, %c0_29, %c0_30] : memref<1x32x256xf32, #tpu.memory_space<vmem>>, vector<1x32x256xf32>
    tpu.vector_store %arg6[%c0_28, %c0_29, %c0_30], %31 {strides = array<i32>} : memref<1x32x256xf32, #tpu.memory_space<vmem>>, vector<1x32x256xf32>,
    return
  }
  func.func @transform_0(%arg0: i32) -> (i32, i32, i32) {
    %c0_i32 = arith.constant 0 : i32
    %c0_i32_0 = arith.constant 0 : i32
    %c0_i32_1 = arith.constant 0 : i32
    return %arg0, %c0_i32, %c0_i32_0 : i32, i32, i32
  }
  func.func @transform_1(%arg0: i32) -> (i32, i32) {
    %c0_i32 = arith.constant 0 : i32
    %c0_i32_0 = arith.constant 0 : i32
    %c0_i32_1 = arith.constant 0 : i32
    return %c0_i32, %c0_i32_0 : i32, i32
  }
  func.func @transform_2(%arg0: i32) -> (i32, i32) {
    %c0_i32 = arith.constant 0 : i32
    %c0_i32_0 = arith.constant 0 : i32
    %c0_i32_1 = arith.constant 0 : i32
    return %c0_i32, %c0_i32_0 : i32, i32
  }
  func.func @transform_3(%arg0: i32) -> (i32, i32) {
    %c0_i32 = arith.constant 0 : i32
    %c0_i32_0 = arith.constant 0 : i32
    %c0_i32_1 = arith.constant 0 : i32
    return %c0_i32, %c0_i32_0 : i32, i32
  }
  func.func @transform_4(%arg0: i32) -> (i32, i32) {
    %c0_i32 = arith.constant 0 : i32
    %c0_i32_0 = arith.constant 0 : i32
    %c0_i32_1 = arith.constant 0 : i32
    return %c0_i32, %c0_i32_0 : i32, i32
  }
  func.func @transform_5(%arg0: i32) -> (i32, i32, i32) {
    %c0_i32 = arith.constant 0 : i32
    %c0_i32_0 = arith.constant 0 : i32
    %c0_i32_1 = arith.constant 0 : i32
    return %arg0, %c0_i32, %c0_i32_0 : i32, i32, i32
  }
}

</mosaic_0001>

<bundles_post_ra>
// kernel: ca_layer.1
= control target key start
LH: loop header
LB: loop body
LE: loop exit
PB: predicated region body
PF: predicated region fallthrough
CT: control target
= control target key end

     0   :  { %s706_s18 = smov 0   ;;  %s800_s0 = inlined_call_operand.vmem [shape: f32[2,32,256], index: 0, kind: input, shape index: {}]   ;;  %s801_s1 = inlined_call_operand.vmem [shape: f32[4,32], index: 1, kind: input, shape index: {}]   ;;  %s802_s2 = inlined_call_operand.vmem [shape: f32[4,1], index: 2, kind: input, shape index: {}]   ;;  %s803_s3 = inlined_call_operand.vmem [shape: f32[32,4], index: 3, kind: input, shape index: {}]   ;;  %s804_s4 = inlined_call_operand.vmem [shape: f32[32,1], index: 4, kind: input, shape index: {}]   ;;  %s805_s5 = inlined_call_operand.vmem [shape: f32[2,32,256], index: 5, kind: output, shape index: {}]  }
   0x1 LB: > { %s576_s19 = sadd.s32 4294967295, %s670_s18   ;;  %p580_p0 = scmp.ge.s32.totalorder %s670_s18, 1  ;;  %s670_s18 = sphi %s706_s18, %s15_s18  }
   0x2   : > { %p187_p1 = scmp.lt.s32.totalorder %s670_s18, 3 }
   0x4   : > { %p188_p2 = pnand %p580_p0, %p187_p1 }
   0x5   : > { %p215_p3 = scmp.lt.s32.totalorder (!%p188_p2), %s576_s19, 1  ;;  %v672_v12 = vmov (!%p188_p2), 0.0|0.0   ;;  %vm673_vm0 = vmmov (!%p188_p2), 0   ;;  %v674_v13 = vmov (!%p188_p2), 0.0   ;;  %vm249_vm1 = vcmask (!%p188_p2), 7168   ;;  %v256_v29 = vld [vmem:[%s803_s3] sm:$0xff] (!%p188_p2) }
   0x6   : > { %191 = sbr.rel (%p188_p2) target bundleno = 791 (0x317), region = 40  ;;  %628 = vmatprep.subr.bf16.mxu0 (!%p188_p2), %v672_v12  ;;  %617 = vmatprep.mubr.msk.f32.mxu0 (!%p188_p2), %vm673_vm0, %v674_v13  ;;  %v254_v28 = vld [vmem:[%s801_s1] sm:$0xf] (!%p188_p2)  ;;  %vm268_vm2 = vcmask (!%p188_p2), 261120   ;;  %vm343_vm3 = vcmask (!%p188_p2), 31744   ;;  %vm356_vm4 = vcmask (!%p188_p2), 1043456  }
   0x7   : > { %622 = vmatprep.mubr.msk.f32.mxu1 (!%p188_p2), %vm343_vm3, %v256_v29  ;;  %v255_v30 = vld [vmem:[%s802_s2] sm:$0xf] (!%p188_p2)  ;;  %v257_v35 = vld [vmem:[%s803_s3 + $0x8] sm:$0xff] (!%p188_p2)  ;;  %v258_v36 = vld [vmem:[%s803_s3 + $0x10] sm:$0xff] (!%p188_p2)  ;;  %v675_v38 = vmov (!%p188_p2), 0  }
   0x8   : > { %v259_v37 = vld [vmem:[%s803_s3 + $0x18] sm:$0xff] (!%p188_p2)  ;;  %647 = vset.pattern.permute.xlu1 (!%p188_p2), %v675_v38  ;;  %646 = vset.pattern.permute.xlu0 (!%p188_p2), %v675_v38  ;;  %v261_v39 = vld [vmem:[%s804_s4 + $0x8] sm:$0xff] (!%p188_p2)  ;;  %v260_v40 = vld [vmem:[%s804_s4] sm:$0xff] (!%p188_p2) }
   0x9   : > { %v263_v45 = vld [vmem:[%s804_s4 + $0x18] sm:$0xff] (!%p188_p2)  ;;  %v262_v47 = vld [vmem:[%s804_s4 + $0x10] sm:$0xff] (!%p188_p2) }
   0xd   : > { %s807_s19 = smov (!%p215_p3, %s576_s19), 1 }
   0xe   : > { %s597_s20 = sshll.u32 %s807_s19, 6 }
   0xf   : > { %s219_s23 = scalar_lea.vmem %s800_s0, %s597_s20  ;;  %s224_s24 = scalar_lea.vmem %s805_s5, %s597_s20 }
  0x10   : > { %v722_v0 = vld [vmem:[%s219_s23 + $0x20] sm:$0xff]  ;;  %v724_v1 = vld [vmem:[%s219_s23 + $0x28] sm:$0xff]  ;;  %v732_v5 = vld [vmem:[%s219_s23 + $0x30] sm:$0xff] }
  0x11   : > { %v726_v2 = vld [vmem:[%s219_s23] sm:$0xff]  ;;  %v239_v3 = vadd.f32 %v724_v1, %v722_v0  ;;  %v730_v4 = vld [vmem:[%s219_s23 + $0x8] sm:$0xff]  ;;  %v734_v6 = vld [vmem:[%s219_s23 + $0x38] sm:$0xff] }
  0x12   : > { %v233_v7 = vadd.f32 %v730_v4, %v726_v2  ;;  %v738_v8 = vld [vmem:[%s219_s23 + $0x10] sm:$0xff]  ;;  %v740_v9 = vld [vmem:[%s219_s23 + $0x18] sm:$0xff]  ;;  %v242_v10 = vadd.f32 %v734_v6, %v732_v5 }
  0x13   : > { %240 = vadd.xlane.f32.xlu1 %v239_v3  ;;  %v236_v11 = vadd.f32 %v740_v9, %v738_v8 }
  0x14   : > { %234 = vadd.xlane.f32.xlu0 %v233_v7 }
  0x17   : > { %243 = vadd.xlane.f32.xlu1 %v242_v10 }
  0x18   : > { %237 = vadd.xlane.f32.xlu0 %v236_v11 }
  0xa0   : > { %v241_v14 = vpop.xlane.xlu1 %240 }
  0xa1   : > { %v247_v15 = vmul.f32 0.00390625, %v241_v14  ;;  %v235_v16 = vpop.xlane.xlu0 %234 }
  0xa2   : > { %v245_v17 = vmul.f32 0.00390625, %v235_v16 }
  0xa3   : > { %252 = vst.msk [vmem:[#allocation2 + $0x10] sm:$0xff] %vm249_vm1, %v247_v15 }
  0xa4   : > { %250 = vst.msk [vmem:[#allocation2] sm:$0xff] %vm249_vm1, %v245_v17  ;;  %v244_v18 = vpop.xlane.xlu1 %243 }
  0xa5   : > { %v248_v19 = vmul.f32 0.00390625, %v244_v18  ;;  %v238_v20 = vpop.xlane.xlu0 %237 }
  0xa6   : > { %v246_v21 = vmul.f32 0.00390625, %v238_v20 }
  0xa7   : > { %253 = vst.msk [vmem:[#allocation2 + $0x18] sm:$0xff] %vm249_vm1, %v248_v19 }
  0xa8   : > { %251 = vst.msk [vmem:[#allocation2 + $0x8] sm:$0xff] %vm249_vm1, %v246_v21 }
  0xaa   : > { %v266_v25 = vld [vmem:[#allocation2 + $0x10] sm:$0xff] }
  0xab   : > { %v264_v22 = vld [vmem:[#allocation2] sm:$0xff] }
  0xae   : > { %v267_v26 = vld [vmem:[#allocation2 + $0x18] sm:$0xff] }
  0xaf   : > { %v265_v23 = vld [vmem:[#allocation2 + $0x8] sm:$0xff]  ;;  %v632_v27 = vpack.c.bf16 %v267_v26, %v266_v25 }
  0xb0   : > { %v629_v24 = vpack.c.bf16 %v265_v23, %v264_v22 }
  0xb2   : > { %630 = vmatpush3.bf16.msra.mxu0 %v629_v24 }
  0xb3   : > { %631 = vmatprep.subr.bf16.mxu0 %v672_v12 }
  0xb6   : > { %633 = vmatpush3.bf16.msra.mxu0 %v632_v27 }
  0xb9   : > { %618 = vmatmul.mubr.msk.f32.vlgmr.msra.gmra.mrb[0].mxu0 %vm268_vm2, %v254_v28 }
 0x18c   : > { %v338_v31 = vpop.f32.mrb[0].mxu0 }
 0x18d   : > { %v339_v32 = vadd.f32 %v338_v31, %v255_v30  ;;  %v619_v33 = vpop.f32.mrb[1].mxu0 }
 0x18f   : > { %v342_v34 = vmax.f32 %v339_v32, 0.0 }
 0x191   : > { %620 = vmatprep.subr.msk.mxu1 %vm356_vm4, %v342_v34 }
 0x192   : > { %621 = vmatpush3.msk.msra.mxu1 %vm356_vm4, %v342_v34 }
 0x193   : > { %623 = vmatmul.mubr.msk.f32.vlgmr.msra.gmra.mrb[0].mxu1 %vm343_vm3, %v257_v35 }
 0x194   : > { %625 = vmatprep.mubr.msk.f32.mxu1 %vm343_vm3, %v258_v36 }
 0x197   : > { %626 = vmatmul.mubr.msk.f32.gmra.mrb[2].mxu1 %vm343_vm3, %v259_v37 }
 0x266   : > { %v624_v41 = vpop.f32.mrb[0].mxu1 }
 0x267   : > { %v432_v42 = vadd.f32 %v624_v41, %v261_v39  ;;  %v426_v43 = vpop.f32.mrb[1].mxu1 }
 0x268   : > { %v427_v44 = vadd.f32 %v426_v43, %v260_v40 }
 0x269   : > { %v592_v46 = vmul.f32 -1.442695, %v432_v42 }
 0x26a   : > { %v591_v48 = vmul.f32 -1.442695, %v427_v44  ;;  %v627_v49 = vpop.f32.mrb[2].mxu1 }
 0x26b   : > { %648 = vpow2.f32 %v592_v46  ;;  %v442_v50 = vadd.f32 %v627_v49, %v263_v45  ;;  %v436_v51 = vpop.f32.mrb[3].mxu1 }
 0x26c   : > { %650 = vpow2.f32 %v591_v48  ;;  %v437_v52 = vadd.f32 %v436_v51, %v262_v47 }
 0x26d   : > { %v594_v53 = vmul.f32 -1.442695, %v442_v50 }
 0x26e   : > { %v593_v54 = vmul.f32 -1.442695, %v437_v52 }
 0x26f   : > { %652 = vpow2.f32 %v594_v53 }
 0x270   : > { %654 = vpow2.f32 %v593_v54 }
 0x275   : > { %v649_v55 = vpop.eup %648 }
 0x276   : > { %v651_v56 = vpop.eup %650  ;;  %v458_v57 = vadd.f32 1.0, %v649_v55 }
 0x277   : > { %v457_v58 = vadd.f32 1.0, %v651_v56 }
 0x278   : > { %656 = vrcp.f32 %v458_v57 }
 0x279   : > { %v653_v59 = vpop.eup %652  ;;  %658 = vrcp.f32 %v457_v58 }
 0x27a   : > { %v655_v60 = vpop.eup %654  ;;  %v460_v61 = vadd.f32 1.0, %v653_v59 }
 0x27b   : > { %v459_v62 = vadd.f32 1.0, %v655_v60 }
 0x27c   : > { %660 = vrcp.f32 %v460_v61 }
 0x27d   : > { %662 = vrcp.f32 %v459_v62 }
 0x282   : > { %v657_v63 = vpop.eup %656 }
 0x283   : > { %v659_v3 = vpop.eup %658  ;;  %470 = vst.msk [vmem:[#allocation2 + $0x8] sm:$0xff] %vm249_vm1, %v657_v63 }
 0x284   : > { %469 = vst.msk [vmem:[#allocation2] sm:$0xff] %vm249_vm1, %v659_v3 }
 0x286   : > { %v661_v7 = vpop.eup %660 }
 0x287   : > { %v663_v10 = vpop.eup %662  ;;  %472 = vst.msk [vmem:[#allocation2 + $0x18] sm:$0xff] %vm249_vm1, %v661_v7 }
 0x288   : > { %471 = vst.msk [vmem:[#allocation2 + $0x10] sm:$0xff] %vm249_vm1, %v663_v10 }
 0x28a   : > { %v482_v11 = vld [vmem:[#allocation2 + $0x8] sm:$0xff] }
 0x28b   : > { %492 = vperm.xlu1 %647, %v482_v11   ;;  %v481_v12 = vld [vmem:[#allocation2] sm:$0xff] }
 0x28c   : > { %487 = vperm.xlu0 %646, %v481_v12  }
 0x28e   : > { %v484_v14 = vld [vmem:[#allocation2 + $0x18] sm:$0xff] }
 0x28f   : > { %v483_v13 = vld [vmem:[#allocation2 + $0x10] sm:$0xff] }
 0x290   : > { %497 = vperm.xlu1 %647, %v483_v13  }
 0x294   : > { %502 = vperm.xlu1 %647, %v484_v14  }
 0x30a   : > { %v493_v15 = vpop.permute.xlu1 %492 }
 0x30b   : > { %v507_v16 = vmul.f32 %v493_v15, %v738_v8  ;;  %v508_v17 = vmul.f32 %v493_v15, %v740_v9  ;;  %v488_v18 = vpop.permute.xlu0 %487 }
 0x30c   : > { %v505_v19 = vmul.f32 %v488_v18, %v726_v2  ;;  %v506_v20 = vmul.f32 %v488_v18, %v730_v4 }
 0x30d   : > { %515 = vst [vmem:[%s224_s24 + $0x10] sm:$0xff] %v507_v16  ;;  %516 = vst [vmem:[%s224_s24 + $0x18] sm:$0xff] %v508_v17 }
 0x30e   : > { %513 = vst [vmem:[%s224_s24] sm:$0xff] %v505_v19  ;;  %514 = vst [vmem:[%s224_s24 + $0x8] sm:$0xff] %v506_v20 }
 0x30f   : > { %v498_v21 = vpop.permute.xlu1 %497 }
 0x310   : > { %v509_v22 = vmul.f32 %v498_v21, %v722_v0  ;;  %v510_v23 = vmul.f32 %v498_v21, %v724_v1 }
 0x312   : > { %517 = vst [vmem:[%s224_s24 + $0x20] sm:$0xff] %v509_v22  ;;  %518 = vst [vmem:[%s224_s24 + $0x28] sm:$0xff] %v510_v23 }
 0x313   : > { %v503_v24 = vpop.permute.xlu1 %502 }
 0x314   : > { %v511_v8 = vmul.f32 %v503_v24, %v732_v5  ;;  %v512_v9 = vmul.f32 %v503_v24, %v734_v6 }
 0x316   : > { %519 = vst [vmem:[%s224_s24 + $0x30] sm:$0xff] %v511_v8  ;;  %520 = vst [vmem:[%s224_s24 + $0x38] sm:$0xff] %v512_v9 }
 0x317 PF: > { %s15_s18 = sadd.s32 1, %s670_s18  }
 0x318   : > { %p12_p4 = scmp.ge.s32.totalorder %s15_s18, 4  }
 0x31a   :  { %14 = sbr.rel (!%p12_p4) target bundleno = 1 (0x1), region = 70 }

</bundles_post_ra>
